<compile_context>
chip_gen: v6e
topology: v6e:2x2x1
jax: 0.10.0
libtpu: 0.0.40
codegen_flags: <defaults>
</compile_context>

<pallas_src>
import jax
import jax.numpy as jnp
from jax import lax
from jax.experimental import pallas as pl
from jax.experimental.pallas import tpu as pltpu


def _round_up(x, m):
    return ((x + m - 1) // m) * m


def _make_polar_iou_kernel(n_rows, tile_n, needs_mask, has_weight):
    """Per-tile kernel: reduce tile_n rows to one weighted partial sum."""

    def kernel(*refs):
        if has_weight:
            pred_ref, target_ref, weight_ref, out_ref = refs
        else:
            pred_ref, target_ref, out_ref = refs

        p = pred_ref[...].astype(jnp.float32)            # (tile_n, R)
        t = target_ref[...].astype(jnp.float32)          # (tile_n, R)

        l_max = jnp.maximum(p, t)                        # elementwise max
        l_min = jnp.minimum(p, t)                        # elementwise min

        num = jnp.sum(l_max, axis=1, keepdims=True)      # (tile_n, 1)
        den = jnp.sum(l_min, axis=1, keepdims=True)      # (tile_n, 1)

        # log(num/den) == log(num) - log(den): two EUP logs, no VPU divide.
        per_row = jnp.log(num) - jnp.log(den)            # (tile_n, 1)

        if has_weight:
            per_row = per_row * weight_ref[...].astype(jnp.float32)

        if needs_mask:
            # Overhanging rows of the last tile hold unspecified data; select
            # them to exactly 0 (where-select, never multiply-by-zero: NaN*0=NaN).
            row = (pl.program_id(0) * tile_n
                   + lax.broadcasted_iota(jnp.int32, per_row.shape, 0))
            per_row = jnp.where(row < n_rows, per_row, 0.0)

        partial = jnp.sum(per_row)                       # scalar per-tile partial

        # Lane-dense (1, 8, 128) output block: partial at [0,0,0], zeros
        # elsewhere -> epilogue sum over everything is exact.
        sub = lax.broadcasted_iota(jnp.int32, (1, 8, 128), 1)
        lane = lax.broadcasted_iota(jnp.int32, (1, 8, 128), 2)
        out_ref[...] = jnp.where((sub == 0) & (lane == 0), partial, 0.0)

    return kernel


def polar_iou_loss(pred, target, weight=None, avg_factor=None,
                   loss_weight=1.0, max_tile_n=4096, split_threshold=1024):
    """Pallas-backed PolarIoULoss.forward (bf16 or f32 pred/target accepted)."""
    N, R = pred.shape
    if avg_factor is None:
        avg_factor = N
    has_weight = weight is not None

    # Tile selection (no input padding, ever):
    #  * small N: a single full-extent block (launch overhead dominates).
    #  * larger N: >= 2 tiles (v7x 2-TC sharding), each a multiple of 8 rows
    #    and capped at max_tile_n (VMEM-safe on v5e/v6e/v7x at 32 MiB scoped).
    n8 = _round_up(N, 8)
    if n8 <= min(split_threshold, max_tile_n):
        tile_n = N                                   # full-extent block, no mask
    else:
        tile_n = min(max_tile_n, _round_up(pl.cdiv(n8, 2), 8))
    n_tiles = pl.cdiv(N, tile_n)
    needs_mask = (n_tiles * tile_n) != N

    in_specs = [pl.BlockSpec((tile_n, R), lambda i: (i, 0)),
                pl.BlockSpec((tile_n, R), lambda i: (i, 0))]
    operands = [pred, target]
    if has_weight:
        in_specs.append(pl.BlockSpec((tile_n, 1), lambda i: (i, 0)))
        operands.append(weight.reshape(N, 1).astype(jnp.float32))

    itemsize = jnp.dtype(pred.dtype).itemsize
    cost = pl.CostEstimate(
        flops=4 * N * R + 2 * N,                     # max, min, two row sums, weight+mask
        transcendentals=2 * N,                       # two logs per row
        bytes_accessed=(2 * n8 * 128 * itemsize      # lane-padded (., 36) -> (., 128)
                        + (4 * N if has_weight else 0)
                        + n_tiles * 8 * 128 * 4),
    )

    partials = pl.pallas_call(
        _make_polar_iou_kernel(N, tile_n, needs_mask, has_weight),
        out_shape=jax.ShapeDtypeStruct((n_tiles, 8, 128), jnp.float32),
        grid=(n_tiles,),
        in_specs=in_specs,
        out_specs=pl.BlockSpec((1, 8, 128), lambda i: (i, 0, 0)),
        compiler_params=pltpu.CompilerParams(
            dimension_semantics=("parallel",),       # tiles are independent
            vmem_limit_bytes=32 * 1024 * 1024,
        ),
        cost_estimate=cost,
    )(*operands)

    # Tiny epilogue: sum n_tiles*1024 mostly-zero floats, scale.
    return partials.sum() / jnp.float32(avg_factor) * jnp.float32(loss_weight)


def polar_iou_loss_ref(pred, target, weight, avg_factor, loss_weight=1.0):
    """Pure-JAX reference matching the PyTorch forward exactly."""
    l_max = jnp.maximum(pred, target)
    l_min = jnp.minimum(pred, target)
    loss = jnp.log(l_max.sum(axis=1) / l_min.sum(axis=1))
    if weight is not None:
        loss = loss * weight
    return loss.sum() / avg_factor * loss_weight


if __name__ == "__main__":
    key = jax.random.PRNGKey(0)
    R = 36  # 36 polar rays per sample

    # Case 1: small N, multiple of 8 -> single full-extent block, with weight.
    N1 = 16
    k1, k2, k3, k4 = jax.random.split(key, 4)
    pred1 = jax.random.uniform(k1, (N1, R), jnp.float32, 0.5, 2.0)
    target1 = jax.random.uniform(k2, (N1, R), jnp.float32, 0.5, 2.0)
    weight1 = jax.random.uniform(k3, (N1,), jnp.float32, 0.5, 1.5)
    out1 = jax.block_until_ready(polar_iou_loss(pred1, target1, weight1, N1, 1.0))
    ref1 = polar_iou_loss_ref(pred1, target1, weight1, N1, 1.0)
    assert jnp.allclose(out1, ref1, rtol=1e-5, atol=1e-5), (out1, ref1)

    # Case 2: N=50, forced multi-tile -> exercises partial last tile + mask.
    N2 = 50
    k5, k6, k7, k8 = jax.random.split(k4, 4)
    pred2 = jax.random.uniform(k5, (N2, R), jnp.float32, 0.5, 2.0)
    target2 = jax.random.uniform(k6, (N2, R), jnp.float32, 0.5, 2.0)
    weight2 = jax.random.uniform(k7, (N2,), jnp.float32, 0.5, 1.5)
    out2 = jax.block_until_ready(
        polar_iou_loss(pred2, target2, weight2, N2, 2.0, split_threshold=16))
    ref2 = polar_iou_loss_ref(pred2, target2, weight2, N2, 2.0)
    assert jnp.allclose(out2, ref2, rtol=1e-5, atol=1e-5), (out2, ref2)

    # Case 3: weight=None path (no weight stream into the kernel).
    N3 = 24
    k9, k10, k11 = jax.random.split(k8, 3)
    pred3 = jax.random.uniform(k9, (N3, R), jnp.float32, 0.5, 2.0)
    target3 = jax.random.uniform(k10, (N3, R), jnp.float32, 0.5, 2.0)
    out3 = jax.block_until_ready(polar_iou_loss(pred3, target3, None, None, 1.0))
    ref3 = polar_iou_loss_ref(pred3, target3, None, N3, 1.0)
    assert jnp.allclose(out3, ref3, rtol=1e-5, atol=1e-5), (out3, ref3)

    # Case 4: bf16 pred/target pass-through (non-8-aligned full-extent block).
    N4 = 40
    k12, k13, k14 = jax.random.split(k11, 3)
    pred4 = jax.random.uniform(k12, (N4, R), jnp.float32, 0.5, 2.0).astype(jnp.bfloat16)
    target4 = jax.random.uniform(k13, (N4, R), jnp.float32, 0.5, 2.0).astype(jnp.bfloat16)
    weight4 = jax.random.uniform(k14, (N4,), jnp.float32, 0.5, 1.5)
    out4 = jax.block_until_ready(polar_iou_loss(pred4, target4, weight4, N4, 1.0))
    ref4 = polar_iou_loss_ref(pred4.astype(jnp.float32),
                              target4.astype(jnp.float32), weight4, N4, 1.0)
    assert jnp.allclose(out4, ref4, rtol=1e-5, atol=1e-5), (out4, ref4)

    print("KERNEL_OK")
</pallas_src>

<mosaic_0001>
module attributes {stable_mosaic.version = 11 : i64} {
  func.func @kernel(%arg0: i32, %arg1: memref<16x36xf32, #tpu.memory_space<vmem>>, %arg2: memref<16x36xf32, #tpu.memory_space<vmem>>, %arg3: memref<16x1xf32, #tpu.memory_space<vmem>>, %arg4: memref<1x8x128xf32, #tpu.memory_space<vmem>>) attributes {dimension_semantics = [#tpu.dimension_semantics<parallel>], iteration_bounds = array<i64: 1>, scalar_prefetch = 0 : i64, scratch_operands = 0 : i64, tpu.core_type = #tpu.core_type<tc>, window_params = [{transform_indices = @transform_0, window_bounds = array<i64: 16, 36>}, {transform_indices = @transform_1, window_bounds = array<i64: 16, 36>}, {transform_indices = @transform_2, window_bounds = array<i64: 16, 1>}, {transform_indices = @transform_3, window_bounds = array<i64: 1, 8, 128>}]} {
    %c0 = arith.constant 0 : index
    %c0_0 = arith.constant 0 : index
    %0 = vector.load %arg1[%c0, %c0_0] : memref<16x36xf32, #tpu.memory_space<vmem>>, vector<16x36xf32>
    %c0_1 = arith.constant 0 : index
    %c0_2 = arith.constant 0 : index
    %1 = vector.load %arg2[%c0_1, %c0_2] : memref<16x36xf32, #tpu.memory_space<vmem>>, vector<16x36xf32>
    %2 = arith.maximumf %0, %1 : vector<16x36xf32>
    %3 = arith.minimumf %0, %1 : vector<16x36xf32>
    %cst = arith.constant dense<0.000000e+00> : vector<16xf32>
    %4 = vector.multi_reduction <add>, %2, %cst [1] : vector<16x36xf32> to vector<16xf32>
    %5 = vector.shape_cast %4 : vector<16xf32> to vector<16x1xf32>
    %cst_3 = arith.constant dense<0.000000e+00> : vector<16xf32>
    %6 = vector.multi_reduction <add>, %3, %cst_3 [1] : vector<16x36xf32> to vector<16xf32>
    %7 = vector.shape_cast %6 : vector<16xf32> to vector<16x1xf32>
    %8 = math.log %5 : vector<16x1xf32>
    %9 = math.log %7 : vector<16x1xf32>
    %10 = arith.subf %8, %9 : vector<16x1xf32>
    %c0_4 = arith.constant 0 : index
    %c0_5 = arith.constant 0 : index
    %11 = vector.load %arg3[%c0_4, %c0_5] : memref<16x1xf32, #tpu.memory_space<vmem>>, vector<16x1xf32>
    %12 = arith.mulf %10, %11 : vector<16x1xf32>
    %13 = vector.shape_cast %12 : vector<16x1xf32> to vector<1x16x1xf32>
    %cst_6 = arith.constant dense<0.000000e+00> : vector<1xf32>
    %14 = vector.multi_reduction <add>, %13, %cst_6 [1, 2] : vector<1x16x1xf32> to vector<1xf32>
    %15 = vector.shape_cast %14 : vector<1xf32> to vector<1x1x1xf32>
    %16 = vector.extract %15[0, 0, 0] : f32 from vector<1x1x1xf32>
    %17 = tpu.iota {dimensions = array<i32: 1>} : vector<1x8x128xi32>
    %18 = tpu.iota {dimensions = array<i32: 2>} : vector<1x8x128xi32>
    %c0_i32 = arith.constant 0 : i32
    %19 = vector.broadcast %c0_i32 : i32 to vector<1x8x128xi32>
    %20 = arith.cmpi eq, %17, %19 : vector<1x8x128xi32>
    %c0_i32_7 = arith.constant 0 : i32
    %21 = vector.broadcast %c0_i32_7 : i32 to vector<1x8x128xi32>
    %22 = arith.cmpi eq, %18, %21 : vector<1x8x128xi32>
    %23 = arith.andi %20, %22 : vector<1x8x128xi1>
    %cst_8 = arith.constant 0.000000e+00 : f32
    %24 = vector.broadcast %16 : f32 to vector<1x8x128xf32>
    %25 = vector.broadcast %cst_8 : f32 to vector<1x8x128xf32>
    %26 = arith.select %23, %24, %25 : vector<1x8x128xi1>, vector<1x8x128xf32>
    %c0_9 = arith.constant 0 : index
    %c0_10 = arith.constant 0 : index
    %c0_11 = arith.constant 0 : index
    %27 = vector.load %arg4[%c0_9, %c0_10, %c0_11] : memref<1x8x128xf32, #tpu.memory_space<vmem>>, vector<1x8x128xf32>
    tpu.vector_store %arg4[%c0_9, %c0_10, %c0_11], %26 {strides = array<i32>} : memref<1x8x128xf32, #tpu.memory_space<vmem>>, vector<1x8x128xf32>,
    return
  }
  func.func @transform_0(%arg0: i32) -> (i32, i32) {
    %c0_i32 = arith.constant 0 : i32
    %c0_i32_0 = arith.constant 0 : i32
    return %arg0, %c0_i32 : i32, i32
  }
  func.func @transform_1(%arg0: i32) -> (i32, i32) {
    %c0_i32 = arith.constant 0 : i32
    %c0_i32_0 = arith.constant 0 : i32
    return %arg0, %c0_i32 : i32, i32
  }
  func.func @transform_2(%arg0: i32) -> (i32, i32) {
    %c0_i32 = arith.constant 0 : i32
    %c0_i32_0 = arith.constant 0 : i32
    return %arg0, %c0_i32 : i32, i32
  }
  func.func @transform_3(%arg0: i32) -> (i32, i32, i32) {
    %c0_i32 = arith.constant 0 : i32
    %c0_i32_0 = arith.constant 0 : i32
    %c0_i32_1 = arith.constant 0 : i32
    return %arg0, %c0_i32, %c0_i32_0 : i32, i32, i32
  }
}

</mosaic_0001>

<bundles_post_ra>
// kernel: tpu_custom_call.1
= control target key start
LH: loop header
LB: loop body
LE: loop exit
PB: predicated region body
PF: predicated region fallthrough
CT: control target
= control target key end

     0   :  { %8 = vsyncpa [#allocation3], 0  ;;  %s202_s0 = inlined_call_operand.vmem [shape: f32[16,36], index: 0, kind: input, shape index: {}]   ;;  %s203_s1 = inlined_call_operand.hbm [shape: f32[16,36], index: 1, kind: input, shape index: {}]   ;;  %s204_s2 = inlined_call_operand.vmem [shape: f32[16,1], index: 2, kind: input, shape index: {}]   ;;  %s205_s3 = inlined_call_operand.hbm [shape: f32[1,8,128], index: 3, kind: output, shape index: {}]  }
   0x1   :  { %9 = vsyncpa [#allocation4], 0  ;;  %s160_s12 = smov [#allocation2]  }
   0x2   :  { %s17_s13 = sshll.u32 %s160_s12, 4  ;;  %s18_s13 = int_to_ptr.vmem [resolvable:$true] %s17_s13 }
   0x3   :  { %s124_s14 = scalar_lea.vmem %s18_s13, 256  ;;  %p129_p1 = scmp.lt.s32.totalorder %s18_s13, %s18_s13 }
   0x4   :  { %p125_p0 = scmp.ne.s32.totalorder %s18_s13, %s124_s14  ;;  %p130_p2 = scmp.lt.s32.totalorder %s124_s14, %s124_s14 }
   0x6   :  { %p131_p3 = por %p130_p2, %p129_p1 }
   0x8   :  { %p132_p4 = pnand %p131_p3, %p125_p0 }
   0xa   :  { %135 = shalt.err (!%p132_p4)
}
   0xb   :  { %s161_s15 = smov 128   ;;  %s162_s16 = smov 8  }
   0xc   :  { %23 = dma.hbm_to_vmem [thread:$0]  %s203_s1, 256, %s18_s13, [#allocation3], %s161_s15, %s161_s15, %s162_s16  }
   0xd   :  { %156 = dma.done.wait [#allocation3], 256  }
   0xe   :  { %157 = vsyncadd [#allocation3], 4294967040  ;;  %v29_v0 = vld [vmem:[%s202_s0] sm:$0xff]  ;;  %vm37_vm0 = vcmask 293888   ;;  %v30_v2 = vld [vmem:[%s202_s0 + $0x8] sm:$0xff]  ;;  %vm64_vm1 = vcmask 7168   ;;  %v77_v40 = vlaneseq }
   0xf   :  { %v31_v1 = vld [vmem:[#allocation2] sm:$0xff]  ;;  %v32_v5 = vld [vmem:[#allocation2 + $0x8] sm:$0xff] }
  0x10   :  { %v35_v3 = vmin.f32 %v29_v0, %v31_v1  ;;  %v33_v4 = vmax.f32 %v29_v0, %v31_v1  ;;  %v36_v6 = vmin.f32 %v30_v2, %v32_v5  ;;  %v34_v7 = vmax.f32 %v30_v2, %v32_v5  ;;  %v60_v24 = vld [vmem:[%s204_s2] sm:$0xff]  ;;  %v61_v26 = vld [vmem:[%s204_s2 + $0x8] sm:$0xff]  ;;  %s163_s2 = smov [#allocation5]  }
  0x11   :  { %v78_v41 = vshrl.u32 %v77_v40, 7  ;;  %v80_v42 = vand.u32 127, %v77_v40  ;;  %s93_s25 = sshll.u32 %s163_s2, 4  ;;  %s94_s25 = int_to_ptr.vmem [resolvable:$true] %s93_s25 }
  0x12   :  { %v44_v8 = vsel %vm37_vm0, %v35_v3, 0.0  ;;  %v38_v9 = vsel %vm37_vm0, %v33_v4, 0.0  ;;  %v47_v10 = vsel %vm37_vm0, %v36_v6, 0.0  ;;  %v41_v11 = vsel %vm37_vm0, %v34_v7, 0.0  ;;  %s136_s27 = scalar_lea.vmem %s94_s25, 128  ;;  %p141_p6 = scmp.lt.s32.totalorder %s94_s25, %s94_s25 }
  0x13   :  { %45 = vadd.xlane.f32.xlu1 %v44_v8  ;;  %39 = vadd.xlane.f32.xlu0 %v38_v9  ;;  %vm81_vm2 = vcmp.eq.s32.totalorder %v78_v41, 0  ;;  %vm82_vm3 = vcmp.eq.s32.totalorder %v80_v42, 0  ;;  %p137_p5 = scmp.ne.s32.totalorder %s94_s25, %s136_s27  ;;  %p142_p7 = scmp.lt.s32.totalorder %s136_s27, %s136_s27 }
  0x14   :  { %vm83_vm4 = vmand %vm81_vm2, %vm82_vm3 }
  0x15   :  { %p143_p8 = por %p142_p7, %p141_p6 }
  0x17   :  { %48 = vadd.xlane.f32.xlu1 %v47_v10  ;;  %42 = vadd.xlane.f32.xlu0 %v41_v11  ;;  %p144_p9 = pnand %p143_p8, %p137_p5 }
  0x9c   :  { %v46_v12 = vpop.xlane.xlu1 %45  ;;  %v40_v13 = vpop.xlane.xlu0 %39 }
  0x9d   :  { %108 = vlog2.f32 %v46_v12 }
  0x9e   :  { %110 = vlog2.f32 %v40_v13 }
  0xa0   :  { %v49_v14 = vpop.xlane.xlu1 %48  ;;  %v43_v15 = vpop.xlane.xlu0 %42 }
  0xa1   :  { %112 = vlog2.f32 %v49_v14 }
  0xa2   :  { %114 = vlog2.f32 %v43_v15 }
  0xaa   :  { %v109_v16 = vpop.eup %108 }
  0xab   :  { %v111_v17 = vpop.eup %110  ;;  %v55_v18 = vmul.f32 0.6931472, %v109_v16 }
  0xac   :  { %v51_v19 = vmul.f32 0.6931472, %v111_v17 }
  0xae   :  { %v113_v20 = vpop.eup %112  ;;  %v58_v21 = vsub.f32 %v51_v19, %v55_v18 }
  0xaf   :  { %v115_v22 = vpop.eup %114  ;;  %v57_v23 = vmul.f32 0.6931472, %v113_v20 }
  0xb0   :  { %v53_v25 = vmul.f32 0.6931472, %v115_v22  ;;  %v62_v28 = vmul.f32 %v60_v24, %v58_v21 }
  0xb2   :  { %v59_v27 = vsub.f32 %v53_v25, %v57_v23  ;;  %v65_v30 = vsel %vm64_vm1, %v62_v28, 0.0 }
  0xb4   :  { %v63_v29 = vmul.f32 %v61_v26, %v59_v27 }
  0xb6   :  { %v66_v31 = vsel %vm64_vm1, %v63_v29, 0.0 }
  0xb7   :  { %v67_v32 = vadd.f32 %v66_v31, %v65_v30 }
  0xb9   :  { %68 = vadd.xlane.f32.xlu0 %v67_v32 }
 0x142   :  { %v69_v33 = vpop.xlane.xlu0 %68 }
 0x143   :  { %v70_v34 = vrot.slane %v69_v33, 4 }
 0x145   :  { %v71_v35 = vadd.f32 %v70_v34, %v69_v33 }
 0x147   :  { %v72_v36 = vrot.slane %v71_v35, 2 }
 0x149   :  { %v73_v37 = vadd.f32 %v72_v36, %v71_v35 }
 0x14b   :  { %v74_v38 = vrot.slane %v73_v37, 1 }
 0x14d   :  { %v75_v39 = vadd.f32 %v74_v38, %v73_v37 }
 0x14f   :  { %102 = vpush %v75_v39 }
 0x180   :  { %s103_s26 = spop %102 }
 0x181   :  { %v84_v43 = vstv %s103_s26 }
 0x182   :  { %v85_v44 = vsel %vm83_vm4, %v84_v43, 0.0 }
 0x183   :  { %86 = vst [vmem:[#allocation5] sm:$0xff] %v85_v44 }
 0x184   :  { %147 = shalt.err (!%p144_p9)
}
 0x185   :  { %96 = dma.vmem_to_hbm [thread:$0]  %s94_s25, 128, %s205_s3, [#allocation4]  }
 0x186   :  { %158 = dma.done.wait [#allocation4], 128  }
 0x187   :  { %159 = vsyncadd [#allocation4], 4294967168 }
 0x188   :  { %100 = vsyncpa [#allocation3], 1 }
 0x189   :  { %101 = vsyncpa [#allocation4], 1 }

</bundles_post_ra>
